<compile_context>
chip_gen: v5e
topology: v5e:2x2
jax: 0.10.0
libtpu: 0.0.40
codegen_flags: <defaults>
</compile_context>

<pallas_src>
import math

import jax
import jax.numpy as jnp
from jax.experimental import pallas as pl
from jax.experimental.pallas import tpu as pltpu

LANE = 128             # TPU lane width
SUBLANE = 8            # TPU sublane width
TILE_B_DEFAULT = 1024  # batch rows per grid step (sweep 512-2048 for prod)


def _round_up(n, m):
    return ((n + m - 1) // m) * m


# ----------------------------------------------------------------------------
# Kernel: all four Linear layers fused, weights resident in VMEM.
#   x_ref:  [TILE_B, IN_DIM]   bf16 (batch tile, true/unpadded feature width)
#   wN_ref: [K, N_PAD]         bf16 (transposed vs nn.Linear, N padded to 128)
#   bN_ref: [1, N_PAD]         f32
#   o_ref:  [TILE_B, OUT_PAD]  bf16 (lane-dense slab; sliced/cast in wrapper)
# ----------------------------------------------------------------------------
def mlp_kernel(x_ref,
               w1_ref, b1_ref,
               w2_ref, b2_ref,
               w3_ref, b3_ref,
               w4_ref, b4_ref,
               o_ref):
    # layer 1: in -> 512 (pads 500); bf16 MXU matmul, f32 accumulate/bias/ReLU
    h = jnp.dot(x_ref[...], w1_ref[...], preferred_element_type=jnp.float32)
    h = jnp.maximum(h + b1_ref[...], 0.0)
    # layer 2: 512 -> 128 (pads 100)
    h = jnp.dot(h.astype(jnp.bfloat16), w2_ref[...],
                preferred_element_type=jnp.float32)
    h = jnp.maximum(h + b2_ref[...], 0.0)
    # layer 3: 128 -> 128 (pads 20)
    h = jnp.dot(h.astype(jnp.bfloat16), w3_ref[...],
                preferred_element_type=jnp.float32)
    h = jnp.maximum(h + b3_ref[...], 0.0)
    # layer 4: 128 -> 128 (pads output), no activation; lane-dense bf16 store
    out = jnp.dot(h.astype(jnp.bfloat16), w4_ref[...],
                  preferred_element_type=jnp.float32)
    o_ref[...] = (out + b4_ref[...]).astype(o_ref.dtype)


# ----------------------------------------------------------------------------
# Wrapper: batch tiling, bf16 activation I/O, VMEM-resident weights.
# ----------------------------------------------------------------------------
def mlp_forward(x, kernel_params, out_dim, *, tile_b=TILE_B_DEFAULT):
    batch, in_dim = x.shape
    assert in_dim == kernel_params[0].shape[0]
    out_pad = kernel_params[-1].shape[-1]   # padded (lane-dense) output width

    # --- batch tiling --------------------------------------------------------
    tile_b = max(SUBLANE, min(tile_b, _round_up(batch, SUBLANE)))
    # v7x megacore: keep >= 2 grid steps when the batch is big enough to split,
    # so the "parallel" axis can actually shard across both TensorCores.
    if _round_up(batch, tile_b) // tile_b < 2 and batch >= 2 * SUBLANE:
        tile_b = _round_up(-(-batch // 2), SUBLANE)
    padded_batch = _round_up(batch, tile_b)

    # --- input: bf16 cast fused with batch-only padding ----------------------
    x_p = x.astype(jnp.bfloat16)
    if padded_batch != batch:
        x_p = jnp.pad(x_p, ((0, padded_batch - batch), (0, 0)))

    # --- BlockSpecs -----------------------------------------------------------
    def const_spec(arr):
        # Full-array block, constant index_map, single buffer: DMA'd once,
        # VMEM-resident across all grid steps (never re-fetched).
        return pl.BlockSpec(arr.shape, lambda i: (0,) * arr.ndim,
                            pipeline_mode=pl.Buffered(1))

    grid_spec = pltpu.PrefetchScalarGridSpec(
        num_scalar_prefetch=0,
        grid=(padded_batch // tile_b,),
        in_specs=[pl.BlockSpec((tile_b, in_dim), lambda i: (i, 0))]
        + [const_spec(p) for p in kernel_params],
        out_specs=pl.BlockSpec((tile_b, out_pad), lambda i: (i, 0)),
    )

    # --- explicit VMEM budget (v7x: 64 MiB/TC; v5e scoped default: 16 MiB) ---
    weight_bytes = sum(math.prod(p.shape) * p.dtype.itemsize
                       for p in kernel_params)
    est = (2 * tile_b * in_dim * 2      # double-buffered bf16 input tiles
           + 2 * tile_b * out_pad * 2   # double-buffered bf16 output tiles
           + weight_bytes)              # single-buffered resident weights
    vmem_limit = min(max(2 * est + (4 << 20), 32 << 20), 64 << 20)

    out = pl.pallas_call(
        mlp_kernel,
        out_shape=jax.ShapeDtypeStruct((padded_batch, out_pad), jnp.bfloat16),
        grid_spec=grid_spec,
        compiler_params=pltpu.CompilerParams(
            dimension_semantics=("parallel",),   # megacore sharding on v7x
            vmem_limit_bytes=vmem_limit,
        ),
    )(x_p, *kernel_params)

    return out[:batch, :out_dim].astype(jnp.float32)


# ----------------------------------------------------------------------------
# Parameter construction (nn.Linear-style init), then padding + bf16 cast.
# ----------------------------------------------------------------------------
def init_linear_params(key, in_features, out_features):
    """U(-1/sqrt(in), 1/sqrt(in)) init, weight stored [in, out] (transposed)."""
    kw, kb = jax.random.split(key)
    bound = 1.0 / (in_features ** 0.5)
    w = jax.random.uniform(kw, (in_features, out_features), jnp.float32,
                           minval=-bound, maxval=bound)
    b = jax.random.uniform(kb, (out_features,), jnp.float32,
                           minval=-bound, maxval=bound)
    return w, b


def make_params(key, input_size, output_size):
    dims = [(input_size, 500), (500, 100), (100, 20), (20, output_size)]
    keys = jax.random.split(key, len(dims))
    return [init_linear_params(k, din, dout) for k, (din, dout) in zip(keys, dims)]


def pad_params_for_kernel(params):
    """Zero-pad output feature dims to multiples of 128; weights -> bf16,
    biases -> f32 [1, N_pad]. Layer-1 K stays at the true input width (the
    full-array weight block is exempt from the 128-divisibility rule), so the
    input activations never need a feature-dim pad pass. Padded output lanes
    stay exactly zero through bias (0) and ReLU, so results are exact."""
    kernel_params = []
    prev = params[0][0].shape[0]            # true, unpadded input width
    for w, b in params:
        din, dout = w.shape
        kp, op = prev, _round_up(dout, LANE)
        w_p = jnp.zeros((kp, op), jnp.float32).at[:din, :dout].set(w)
        b_p = jnp.zeros((1, op), jnp.float32).at[0, :dout].set(b)
        kernel_params.extend([w_p.astype(jnp.bfloat16), b_p])
        prev = op
    return tuple(kernel_params)


# ----------------------------------------------------------------------------
# References
# ----------------------------------------------------------------------------
def reference_forward_f32(x, params):
    """Pure-f32 reference of the PyTorch forward pass (original semantics)."""
    h = x
    for i, (w, b) in enumerate(params):
        h = h @ w + b
        if i < len(params) - 1:
            h = jnp.maximum(h, 0.0)
    return h


def reference_forward_bf16(x, kernel_params, out_dim):
    """Pure-JAX reference mirroring the kernel numerics (bf16 operands,
    f32 accumulation, bf16 output store, padded output dims)."""
    h = x.astype(jnp.bfloat16)
    ws, bs = kernel_params[0::2], kernel_params[1::2]
    for i, (w, b) in enumerate(zip(ws, bs)):
        h = jnp.dot(h.astype(jnp.bfloat16), w,
                    preferred_element_type=jnp.float32) + b
        if i < len(ws) - 1:
            h = jnp.maximum(h, 0.0)
    return h.astype(jnp.bfloat16)[:, :out_dim].astype(jnp.float32)


if __name__ == "__main__":
    key = jax.random.PRNGKey(0)
    k_params, k_x = jax.random.split(key)

    batch = 8
    input_size = 64    # e.g. n_letters * length
    output_size = 10

    params = make_params(k_params, input_size, output_size)
    kernel_params = pad_params_for_kernel(params)
    x = jax.random.normal(k_x, (batch, input_size), jnp.float32)

    out = mlp_forward(x, kernel_params, output_size)
    out = jax.block_until_ready(out)
    assert out.shape == (batch, output_size)

    # Tight check vs a reference that uses identical (bf16 I/O) numerics.
    ref_bf16 = reference_forward_bf16(x, kernel_params, output_size)
    assert jnp.allclose(out, ref_bf16, atol=2e-2, rtol=2e-2), \
        "mismatch vs bf16-emulating reference"

    # Loose sanity check vs the full-f32 original semantics.
    ref_f32 = reference_forward_f32(x, params)
    assert jnp.allclose(out, ref_f32, atol=1e-1, rtol=1e-1), \
        "mismatch vs f32 reference"

    print("KERNEL_OK")
</pallas_src>

<mosaic_0001>
module attributes {stable_mosaic.version = 11 : i64} {
  func.func @mlp_kernel(%arg0: i32, %arg1: memref<8x64xbf16, #tpu.memory_space<vmem>>, %arg2: memref<64x512xbf16, #tpu.memory_space<vmem>>, %arg3: memref<1x512xf32, #tpu.memory_space<vmem>>, %arg4: memref<512x128xbf16, #tpu.memory_space<vmem>>, %arg5: memref<1x128xf32, #tpu.memory_space<vmem>>, %arg6: memref<128x128xbf16, #tpu.memory_space<vmem>>, %arg7: memref<1x128xf32, #tpu.memory_space<vmem>>, %arg8: memref<128x128xbf16, #tpu.memory_space<vmem>>, %arg9: memref<1x128xf32, #tpu.memory_space<vmem>>, %arg10: memref<8x128xbf16, #tpu.memory_space<vmem>>) attributes {dimension_semantics = [#tpu.dimension_semantics<parallel>], iteration_bounds = array<i64: 1>, scalar_prefetch = 0 : i64, scratch_operands = 0 : i64, tpu.core_type = #tpu.core_type<tc>, window_params = [{transform_indices = @transform_0, window_bounds = array<i64: 8, 64>}, {pipeline_mode = #tpu.pipeline_mode<synchronous>, transform_indices = @transform_1, window_bounds = array<i64: 64, 512>}, {pipeline_mode = #tpu.pipeline_mode<synchronous>, transform_indices = @transform_2, window_bounds = array<i64: 1, 512>}, {pipeline_mode = #tpu.pipeline_mode<synchronous>, transform_indices = @transform_3, window_bounds = array<i64: 512, 128>}, {pipeline_mode = #tpu.pipeline_mode<synchronous>, transform_indices = @transform_4, window_bounds = array<i64: 1, 128>}, {pipeline_mode = #tpu.pipeline_mode<synchronous>, transform_indices = @transform_5, window_bounds = array<i64: 128, 128>}, {pipeline_mode = #tpu.pipeline_mode<synchronous>, transform_indices = @transform_6, window_bounds = array<i64: 1, 128>}, {pipeline_mode = #tpu.pipeline_mode<synchronous>, transform_indices = @transform_7, window_bounds = array<i64: 128, 128>}, {pipeline_mode = #tpu.pipeline_mode<synchronous>, transform_indices = @transform_8, window_bounds = array<i64: 1, 128>}, {transform_indices = @transform_9, window_bounds = array<i64: 8, 128>}]} {
    %c0 = arith.constant 0 : index
    %c0_0 = arith.constant 0 : index
    %0 = vector.load %arg1[%c0, %c0_0] : memref<8x64xbf16, #tpu.memory_space<vmem>>, vector<8x64xbf16>
    %c0_1 = arith.constant 0 : index
    %c0_2 = arith.constant 0 : index
    %1 = vector.load %arg2[%c0_1, %c0_2] : memref<64x512xbf16, #tpu.memory_space<vmem>>, vector<64x512xbf16>
    %cst = arith.constant dense<0.000000e+00> : vector<8x512xf32>
    %2 = tpu.matmul %0, %1, %cst {dimension_numbers = #tpu.dot_dimension_numbers<[1], [0], [0], [1], [0, 0, 1, 1], [], []>} : vector<8x64xbf16>, vector<64x512xbf16>, vector<8x512xf32> -> vector<8x512xf32>
    %c0_3 = arith.constant 0 : index
    %c0_4 = arith.constant 0 : index
    %3 = vector.load %arg3[%c0_3, %c0_4] : memref<1x512xf32, #tpu.memory_space<vmem>>, vector<1x512xf32>
    %4 = vector.broadcast %3 : vector<1x512xf32> to vector<8x512xf32>
    %5 = arith.addf %2, %4 : vector<8x512xf32>
    %cst_5 = arith.constant 0.000000e+00 : f32
    %6 = vector.broadcast %cst_5 : f32 to vector<8x512xf32>
    %7 = arith.maximumf %5, %6 : vector<8x512xf32>
    %8 = arith.truncf %7 : vector<8x512xf32> to vector<8x512xbf16>
    %c0_6 = arith.constant 0 : index
    %c0_7 = arith.constant 0 : index
    %9 = vector.load %arg4[%c0_6, %c0_7] : memref<512x128xbf16, #tpu.memory_space<vmem>>, vector<512x128xbf16>
    %cst_8 = arith.constant dense<0.000000e+00> : vector<8x128xf32>
    %10 = tpu.matmul %8, %9, %cst_8 {dimension_numbers = #tpu.dot_dimension_numbers<[1], [0], [0], [1], [0, 0, 1, 1], [], []>} : vector<8x512xbf16>, vector<512x128xbf16>, vector<8x128xf32> -> vector<8x128xf32>
    %c0_9 = arith.constant 0 : index
    %c0_10 = arith.constant 0 : index
    %11 = vector.load %arg5[%c0_9, %c0_10] : memref<1x128xf32, #tpu.memory_space<vmem>>, vector<1x128xf32>
    %12 = vector.broadcast %11 : vector<1x128xf32> to vector<8x128xf32>
    %13 = arith.addf %10, %12 : vector<8x128xf32>
    %cst_11 = arith.constant 0.000000e+00 : f32
    %14 = vector.broadcast %cst_11 : f32 to vector<8x128xf32>
    %15 = arith.maximumf %13, %14 : vector<8x128xf32>
    %16 = arith.truncf %15 : vector<8x128xf32> to vector<8x128xbf16>
    %c0_12 = arith.constant 0 : index
    %c0_13 = arith.constant 0 : index
    %17 = vector.load %arg6[%c0_12, %c0_13] : memref<128x128xbf16, #tpu.memory_space<vmem>>, vector<128x128xbf16>
    %cst_14 = arith.constant dense<0.000000e+00> : vector<8x128xf32>
    %18 = tpu.matmul %16, %17, %cst_14 {dimension_numbers = #tpu.dot_dimension_numbers<[1], [0], [0], [1], [0, 0, 1, 1], [], []>} : vector<8x128xbf16>, vector<128x128xbf16>, vector<8x128xf32> -> vector<8x128xf32>
    %c0_15 = arith.constant 0 : index
    %c0_16 = arith.constant 0 : index
    %19 = vector.load %arg7[%c0_15, %c0_16] : memref<1x128xf32, #tpu.memory_space<vmem>>, vector<1x128xf32>
    %20 = vector.broadcast %19 : vector<1x128xf32> to vector<8x128xf32>
    %21 = arith.addf %18, %20 : vector<8x128xf32>
    %cst_17 = arith.constant 0.000000e+00 : f32
    %22 = vector.broadcast %cst_17 : f32 to vector<8x128xf32>
    %23 = arith.maximumf %21, %22 : vector<8x128xf32>
    %24 = arith.truncf %23 : vector<8x128xf32> to vector<8x128xbf16>
    %c0_18 = arith.constant 0 : index
    %c0_19 = arith.constant 0 : index
    %25 = vector.load %arg8[%c0_18, %c0_19] : memref<128x128xbf16, #tpu.memory_space<vmem>>, vector<128x128xbf16>
    %cst_20 = arith.constant dense<0.000000e+00> : vector<8x128xf32>
    %26 = tpu.matmul %24, %25, %cst_20 {dimension_numbers = #tpu.dot_dimension_numbers<[1], [0], [0], [1], [0, 0, 1, 1], [], []>} : vector<8x128xbf16>, vector<128x128xbf16>, vector<8x128xf32> -> vector<8x128xf32>
    %c0_21 = arith.constant 0 : index
    %c0_22 = arith.constant 0 : index
    %27 = vector.load %arg9[%c0_21, %c0_22] : memref<1x128xf32, #tpu.memory_space<vmem>>, vector<1x128xf32>
    %28 = vector.broadcast %27 : vector<1x128xf32> to vector<8x128xf32>
    %29 = arith.addf %26, %28 : vector<8x128xf32>
    %30 = arith.truncf %29 : vector<8x128xf32> to vector<8x128xbf16>
    %c0_23 = arith.constant 0 : index
    %c0_24 = arith.constant 0 : index
    %31 = vector.load %arg10[%c0_23, %c0_24] : memref<8x128xbf16, #tpu.memory_space<vmem>>, vector<8x128xbf16>
    tpu.vector_store %arg10[%c0_23, %c0_24], %30 {strides = array<i32>} : memref<8x128xbf16, #tpu.memory_space<vmem>>, vector<8x128xbf16>,
    return
  }
  func.func @transform_0(%arg0: i32) -> (i32, i32) {
    %c0_i32 = arith.constant 0 : i32
    %c0_i32_0 = arith.constant 0 : i32
    return %arg0, %c0_i32 : i32, i32
  }
  func.func @transform_1(%arg0: i32) -> (i32, i32) {
    %c0_i32 = arith.constant 0 : i32
    %c0_i32_0 = arith.constant 0 : i32
    %c0_i32_1 = arith.constant 0 : i32
    return %c0_i32, %c0_i32_0 : i32, i32
  }
  func.func @transform_2(%arg0: i32) -> (i32, i32) {
    %c0_i32 = arith.constant 0 : i32
    %c0_i32_0 = arith.constant 0 : i32
    %c0_i32_1 = arith.constant 0 : i32
    return %c0_i32, %c0_i32_0 : i32, i32
  }
  func.func @transform_3(%arg0: i32) -> (i32, i32) {
    %c0_i32 = arith.constant 0 : i32
    %c0_i32_0 = arith.constant 0 : i32
    %c0_i32_1 = arith.constant 0 : i32
    return %c0_i32, %c0_i32_0 : i32, i32
  }
  func.func @transform_4(%arg0: i32) -> (i32, i32) {
    %c0_i32 = arith.constant 0 : i32
    %c0_i32_0 = arith.constant 0 : i32
    %c0_i32_1 = arith.constant 0 : i32
    return %c0_i32, %c0_i32_0 : i32, i32
  }
  func.func @transform_5(%arg0: i32) -> (i32, i32) {
    %c0_i32 = arith.constant 0 : i32
    %c0_i32_0 = arith.constant 0 : i32
    %c0_i32_1 = arith.constant 0 : i32
    return %c0_i32, %c0_i32_0 : i32, i32
  }
  func.func @transform_6(%arg0: i32) -> (i32, i32) {
    %c0_i32 = arith.constant 0 : i32
    %c0_i32_0 = arith.constant 0 : i32
    %c0_i32_1 = arith.constant 0 : i32
    return %c0_i32, %c0_i32_0 : i32, i32
  }
  func.func @transform_7(%arg0: i32) -> (i32, i32) {
    %c0_i32 = arith.constant 0 : i32
    %c0_i32_0 = arith.constant 0 : i32
    %c0_i32_1 = arith.constant 0 : i32
    return %c0_i32, %c0_i32_0 : i32, i32
  }
  func.func @transform_8(%arg0: i32) -> (i32, i32) {
    %c0_i32 = arith.constant 0 : i32
    %c0_i32_0 = arith.constant 0 : i32
    %c0_i32_1 = arith.constant 0 : i32
    return %c0_i32, %c0_i32_0 : i32, i32
  }
  func.func @transform_9(%arg0: i32) -> (i32, i32) {
    %c0_i32 = arith.constant 0 : i32
    %c0_i32_0 = arith.constant 0 : i32
    return %arg0, %c0_i32 : i32, i32
  }
}

</mosaic_0001>

<bundles_post_ra>
// kernel: tpu_custom_call.1
= control target key start
LH: loop header
LB: loop body
LE: loop exit
PB: predicated region body
PF: predicated region fallthrough
CT: control target
= control target key end

     0   :  { %14 = vsyncpa [#allocation3], 0  ;;  %s1406_s0 = inlined_call_operand.hbm [shape: bf16[8,64], index: 0, kind: input, shape index: {}]   ;;  %s1407_s1 = inlined_call_operand.hbm [shape: bf16[64,512], index: 1, kind: input, shape index: {}]   ;;  %s1408_s2 = inlined_call_operand.hbm [shape: f32[1,512], index: 2, kind: input, shape index: {}]   ;;  %s1409_s3 = inlined_call_operand.hbm [shape: bf16[512,128], index: 3, kind: input, shape index: {}]   ;;  %s1410_s4 = inlined_call_operand.vmem [shape: f32[1,128], index: 4, kind: input, shape index: {}]   ;;  %s1411_s5 = inlined_call_operand.hbm [shape: bf16[128,128], index: 5, kind: input, shape index: {}]   ;;  %s1412_s6 = inlined_call_operand.vmem [shape: f32[1,128], index: 6, kind: input, shape index: {}]   ;;  %s1413_s7 = inlined_call_operand.hbm [shape: bf16[128,128], index: 7, kind: input, shape index: {}]   ;;  %s1414_s8 = inlined_call_operand.vmem [shape: f32[1,128], index: 8, kind: input, shape index: {}]   ;;  %s1415_s9 = inlined_call_operand.hbm [shape: bf16[8,128], index: 9, kind: output, shape index: {}]  }
   0x1   :  { %15 = vsyncpa [#allocation6], 0 }
   0x2   :  { %16 = vsyncpa [#allocation9], 0 }
   0x3   :  { %17 = vsyncpa [#allocation12], 0  ;;  %s34_s11 = sshll.u32 %s1407_s1, 4  ;;  %s35_s11 = int_to_ptr.hbm [resolvable:$true] %s34_s11 }
   0x4   :  { %18 = vsyncpa [#allocation4], 0  ;;  %s1311_s12 = smov [#allocation5]   ;;  %s58_s16 = sshll.u32 %s1409_s3, 4  ;;  %s59_s16 = int_to_ptr.hbm [resolvable:$true] %s58_s16 }
   0x5   :  { %s36_s13 = sshll.u32 %s1311_s12, 4  ;;  %s1312_s17 = smov 256   ;;  %s37_s13 = int_to_ptr.vmem [resolvable:$true] %s36_s13 }
   0x6   :  { %s1313_s18 = smov 16   ;;  %s1314_s19 = smov [#allocation8]  }
   0x7   :  { %42 = dma.hbm_to_vmem [thread:$0]  %s35_s11, 2048, %s37_s13, [#allocation6], %s1312_s17, %s1312_s17, %s1313_s18  }
   0x8   :  { %s60_s20 = sshll.u32 %s1314_s19, 4  ;;  %s1315_s21 = smov 64   ;;  %s61_s20 = int_to_ptr.vmem [resolvable:$true] %s60_s20 }
   0x9   :  { %s1316_s22 = smov 4   ;;  %s24_s24 = sshll.u32 %s1406_s0, 4  ;;  %s25_s24 = int_to_ptr.hbm [resolvable:$true] %s24_s24 }
   0xa   :  { %66 = dma.hbm_to_vmem [thread:$0]  %s59_s16, 4096, %s61_s20, [#allocation9], %s1315_s21, %s1315_s21, %s1316_s22  }
   0xb   :  { %s1317_s25 = smov [#allocation2]   ;;  %s48_s28 = sshll.u32 %s1408_s2, 4  ;;  %s49_s28 = int_to_ptr.hbm [resolvable:$true] %s48_s28 }
   0xc   :  { %s26_s26 = sshll.u32 %s1317_s25, 4  ;;  %s1318_s29 = smov [#allocation7]   ;;  %s27_s26 = int_to_ptr.vmem [resolvable:$true] %s26_s26 }
   0xd   :  { %29 = dma.hbm_to_vmem [thread:$0]  %s25_s24, 64, %s27_s26, [#allocation3]  }
   0xe   :  { %s50_s30 = sshll.u32 %s1318_s29, 4  ;;  %s73_s12 = sshll.u32 %s1411_s5, 4  ;;  %s51_s30 = int_to_ptr.vmem [resolvable:$true] %s50_s30  ;;  %s74_s12 = int_to_ptr.hbm [resolvable:$true] %s73_s12 }
   0xf   :  { %53 = dma.hbm_to_vmem [thread:$0]  %s49_s28, 64, %s51_s30, [#allocation6]  }
  0x10   :  { %s88_s14 = sshll.u32 %s1413_s7, 4  ;;  %s1319_s15 = smov [#allocation10]   ;;  %s89_s14 = int_to_ptr.hbm [resolvable:$true] %s88_s14 }
  0x11   :  { %s75_s16 = sshll.u32 %s1319_s15, 4  ;;  %s1320_s2 = smov [#allocation11]   ;;  %s76_s16 = int_to_ptr.vmem [resolvable:$true] %s75_s16 }
  0x12   :  { %81 = dma.hbm_to_vmem [thread:$0]  %s74_s12, 1024, %s76_s16, [#allocation9], %s1315_s21, %s1315_s21, %s1316_s22  }
  0x13   :  { %s90_s17 = sshll.u32 %s1320_s2, 4  ;;  %s91_s17 = int_to_ptr.vmem [resolvable:$true] %s90_s17 }
  0x14   :  { %96 = dma.hbm_to_vmem [thread:$0]  %s89_s14, 1024, %s91_s17, [#allocation12], %s1315_s21, %s1315_s21, %s1316_s22  }
  0x15   :  { %1301 = dma.done.wait [#allocation3], 64  }
  0x16   :  { %1302 = vsyncadd [#allocation3], 4294967232 }
  0x17   :  { %1303 = dma.done.wait [#allocation6], 2112  }
  0x18   :  { %1304 = vsyncadd [#allocation6], 4294965184 }
  0x19   :  { %1305 = dma.done.wait [#allocation9], 5120  }
  0x1a   :  { %1306 = vsyncadd [#allocation9], 4294962176 }
  0x1b   :  { %1307 = dma.done.wait [#allocation12], 1024  }
  0x1c   :  { %1308 = vsyncadd [#allocation12], 4294966272  ;;  %v845_v0 = vld [vmem:[#allocation5 + $0x60] sm:$0xf]  ;;  %v1069_v1 = vld [vmem:[#allocation5 + $0x6c] sm:$0xf0] }
  0x1d   :  { %v1067_v2 = vld [vmem:[#allocation5 + $0x64] sm:$0xf]  ;;  %v846_v3 = vor.u32 %v1069_v1, %v845_v0  ;;  %v847_v4 = vld [vmem:[#allocation5 + $0x70] sm:$0xf0]  ;;  %v829_v5 = vld [vmem:[#allocation5 + $0x40] sm:$0xf] }
  0x1e   :  { %v1065_v6 = vld [vmem:[#allocation5 + $0x4c] sm:$0xf0]  ;;  %v850_v7 = vor.u32 %v1067_v2, %v847_v4  ;;  %v1063_v8 = vld [vmem:[#allocation5 + $0x44] sm:$0xf]  ;;  %v831_v9 = vld [vmem:[#allocation5 + $0x50] sm:$0xf0] }
  0x1f   :  { %239 = vmatpush.bf16.msra.mxu2 %v846_v3  ;;  %v830_v10 = vor.u32 %v1065_v6, %v829_v5  ;;  %v834_v11 = vor.u32 %v1063_v8, %v831_v9  ;;  %v813_v12 = vld [vmem:[#allocation5 + $0x20] sm:$0xf]  ;;  %v1061_v13 = vld [vmem:[#allocation5 + $0x2c] sm:$0xf0]  ;;  %v1059_v14 = vld [vmem:[#allocation5 + $0x24] sm:$0xf] }
  0x20   :  { %252 = vmatpush.bf16.msra.mxu3 %v850_v7  ;;  %v815_v15 = vld [vmem:[#allocation5 + $0x30] sm:$0xf0]  ;;  %v814_v16 = vor.u32 %v1061_v13, %v813_v12  ;;  %v797_v18 = vld [vmem:[#allocation5] sm:$0xf]  ;;  %v1057_v19 = vld [vmem:[#allocation5 + $0xc] sm:$0xf0] }
  0x21   :  { %v818_v17 = vor.u32 %v1059_v14, %v815_v15  ;;  %v1055_v20 = vld [vmem:[#allocation5 + $0x4] sm:$0xf]  ;;  %v799_v21 = vld [vmem:[#allocation5 + $0x10] sm:$0xf0]  ;;  %v853_v22 = vld [vmem:[#allocation5 + $0x68] sm:$0xf]  ;;  %v798_v26 = vor.u32 %v1057_v19, %v797_v18 }
  0x22   :  { %v1070_v23 = vld [vmem:[#allocation5 + $0x74] sm:$0xf0]  ;;  %v1068_v24 = vld [vmem:[#allocation5 + $0x6c] sm:$0xf]  ;;  %v855_v25 = vld [vmem:[#allocation5 + $0x78] sm:$0xf0]  ;;  %v802_v29 = vor.u32 %v1055_v20, %v799_v21 }
  0x23   :  { %240 = vmatpush.bf16.msra.mxu2 %v830_v10  ;;  %v1078_v27 = vld [vmem:[#allocation8 + $0x38] sm:$0xff]  ;;  %v854_v30 = vor.u32 %v1070_v23, %v853_v22  ;;  %v858_v31 = vor.u32 %v1068_v24, %v855_v25  ;;  %v837_v32 = vld [vmem:[#allocation5 + $0x48] sm:$0xf]  ;;  %v1066_v33 = vld [vmem:[#allocation5 + $0x54] sm:$0xf0]  ;;  %vm231_vm0 = vcmask 523264  }
  0x24   :  { %253 = vmatpush.bf16.msra.mxu3 %v834_v11  ;;  %v1086_v28 = vld [vmem:[#allocation8 + $0x78] sm:$0xff]  ;;  %555 = vmatpush.bf16.msra.mxu0 %v1078_v27  ;;  %v1077_v34 = vld [vmem:[#allocation8 + $0x30] sm:$0xff]  ;;  %v1064_v35 = vld [vmem:[#allocation5 + $0x4c] sm:$0xf]  ;;  %v838_v39 = vor.u32 %v1066_v33, %v837_v32  ;;  %s1321_s21 = smov [#allocation13]   ;;  %s782_s24 = sshll.u32 %s1415_s9, 4  ;;  %s783_s24 = int_to_ptr.hbm [resolvable:$true] %s782_s24 }
  0x25   :  { %568 = vmatpush.bf16.msra.mxu1 %v1086_v28  ;;  %v839_v36 = vld [vmem:[#allocation5 + $0x58] sm:$0xf0]  ;;  %v1085_v37 = vld [vmem:[#allocation8 + $0x70] sm:$0xff]  ;;  %v821_v40 = vld [vmem:[#allocation5 + $0x28] sm:$0xf]  ;;  %s780_s22 = sshll.u32 %s1321_s21, 4  ;;  %s781_s22 = int_to_ptr.vmem [resolvable:$true] %s780_s22 }
  0x26   :  { %v124_v38 = vld [vmem:[#allocation2] sm:$0xf]  ;;  %v1062_v41 = vld [vmem:[#allocation5 + $0x34] sm:$0xf0]  ;;  %v842_v42 = vor.u32 %v1064_v35, %v839_v36  ;;  %v1076_v43 = vld [vmem:[#allocation8 + $0x28] sm:$0xff] }
  0x27   :  { %241 = vmatpush.bf16.msra.mxu2 %v814_v16  ;;  %v1060_v44 = vld [vmem:[#allocation5 + $0x2c] sm:$0xf]  ;;  %v823_v45 = vld [vmem:[#allocation5 + $0x38] sm:$0xf0]  ;;  %v822_v47 = vor.u32 %v1062_v41, %v821_v40  ;;  %v805_v49 = vld [vmem:[#allocation5 + $0x8] sm:$0xf] }
  0x28   :  { %254 = vmatpush.bf16.msra.mxu3 %v818_v17  ;;  %556 = vmatpush.bf16.msra.mxu0 %v1077_v34  ;;  %v1084_v46 = vld [vmem:[#allocation8 + $0x68] sm:$0xff]  ;;  %v826_v48 = vor.u32 %v1060_v44, %v823_v45  ;;  %v1058_v50 = vld [vmem:[#allocation5 + $0x14] sm:$0xf0]  ;;  %v1075_v51 = vld [vmem:[#allocation8 + $0x20] sm:$0xff] }
  0x29   :  { %569 = vmatpush.bf16.msra.mxu1 %v1085_v37  ;;  %v1056_v52 = vld [vmem:[#allocation5 + $0xc] sm:$0xf]  ;;  %v807_v53 = vld [vmem:[#allocation5 + $0x18] sm:$0xf0]  ;;  %v1083_v54 = vld [vmem:[#allocation8 + $0x60] sm:$0xff]  ;;  %v806_v55 = vor.u32 %v1058_v50, %v805_v49 }
  0x2a   :  { %v810_v56 = vor.u32 %v1056_v52, %v807_v53  ;;  %v1074_v57 = vld [vmem:[#allocation8 + $0x18] sm:$0xff]  ;;  %v1073_v61 = vld [vmem:[#allocation8 + $0x10] sm:$0xff]  ;;  %v1072_v1 = vld [vmem:[#allocation8 + $0x8] sm:$0xff] }
  0x2b   :  { %242 = vmatpush.bf16.msra.mxu2 %v798_v26  ;;  %v1082_v58 = vld [vmem:[#allocation8 + $0x58] sm:$0xff]  ;;  %v1081_v62 = vld [vmem:[#allocation8 + $0x50] sm:$0xff]  ;;  %v1080_v2 = vld [vmem:[#allocation8 + $0x48] sm:$0xff] }
  0x2c   :  { %255 = vmatpush.bf16.msra.mxu3 %v802_v29  ;;  %557 = vmatpush.bf16.msra.mxu0 %v1076_v43  ;;  %v1094_v59 = vld [vmem:[#allocation8 + $0xb8] sm:$0xff]  ;;  %v1093_v63 = vld [vmem:[#allocation8 + $0xb0] sm:$0xff]  ;;  %v1092_v3 = vld [vmem:[#allocation8 + $0xa8] sm:$0xff] }
  0x2d   :  { %570 = vmatpush.bf16.msra.mxu1 %v1084_v46  ;;  %v1102_v60 = vld [vmem:[#allocation8 + $0xf8] sm:$0xff]  ;;  %v1101_v0 = vld [vmem:[#allocation8 + $0xf0] sm:$0xff]  ;;  %v1100_v4 = vld [vmem:[#allocation8 + $0xe8] sm:$0xff] }
  0x2e   :  { %859 = vmatmul.msk.bf16.vlgmr.msra.gmra.mxu2 %vm231_vm0, %v124_v38  ;;  %v1071_v5 = vld [vmem:[#allocation8] sm:$0xff]  ;;  %v1090_v9 = vld [vmem:[#allocation8 + $0x98] sm:$0xff]  ;;  %v1089_v11 = vld [vmem:[#allocation8 + $0x90] sm:$0xff] }
  0x2f   :  { %265 = vmatpush.bf16.msrb.mxu2 %v854_v30  ;;  %860 = vmatmul.msk.bf16.vlgmr.msra.gmra.mxu3 %vm231_vm0, %v124_v38  ;;  %v1079_v6 = vld [vmem:[#allocation8 + $0x40] sm:$0xff]  ;;  %v1098_v10 = vld [vmem:[#allocation8 + $0xd8] sm:$0xff]  ;;  %v1097_v12 = vld [vmem:[#allocation8 + $0xd0] sm:$0xff] }
  0x30   :  { %278 = vmatpush.bf16.msrb.mxu3 %v858_v31  ;;  %558 = vmatpush.bf16.msra.mxu0 %v1075_v51  ;;  %v1091_v7 = vld [vmem:[#allocation8 + $0xa0] sm:$0xff]  ;;  %v1088_v13 = vld [vmem:[#allocation8 + $0x88] sm:$0xff]  ;;  %v141_v17 = vld [vmem:[#allocation7] sm:$0xf] }
  0x31   :  { %571 = vmatpush.bf16.msra.mxu1 %v1083_v54  ;;  %v1099_v8 = vld [vmem:[#allocation8 + $0xe0] sm:$0xff]  ;;  %v1096_v14 = vld [vmem:[#allocation8 + $0xc8] sm:$0xff]  ;;  %v143_v18 = vperm.slane %v141_v17, 0  ;;  %v144_v19 = vperm.slane %v141_v17, 1  ;;  %v145_v30 = vperm.slane %v141_v17, 2  ;;  %v146_v31 = vperm.slane %v141_v17, 3 }
  0x32   :  { %v1087_v15 = vld [vmem:[#allocation8 + $0x80] sm:$0xff]  ;;  %v1109_v43 = vld [vmem:[#allocation10 + $0x30] sm:$0xff]  ;;  %v1108_v44 = vld [vmem:[#allocation10 + $0x28] sm:$0xff] }
  0x33   :  { %266 = vmatpush.bf16.msrb.mxu2 %v838_v39  ;;  %v1095_v16 = vld [vmem:[#allocation8 + $0xc0] sm:$0xff]  ;;  %v1106_v46 = vld [vmem:[#allocation10 + $0x18] sm:$0xff]  ;;  %v1117_v53 = vld [vmem:[#allocation11 + $0x30] sm:$0xff] }
  0x34   :  { %279 = vmatpush.bf16.msrb.mxu3 %v842_v42  ;;  %559 = vmatpush.bf16.msra.mxu0 %v1074_v57  ;;  %v1110_v42 = vld [vmem:[#allocation10 + $0x38] sm:$0xff]  ;;  %v1107_v45 = vld [vmem:[#allocation10 + $0x20] sm:$0xff]  ;;  %v1116_v54 = vld [vmem:[#allocation11 + $0x28] sm:$0xff] }
  0x35   :  { %572 = vmatpush.bf16.msra.mxu1 %v1082_v58  ;;  %v1103_v49 = vld [vmem:[#allocation10] sm:$0xff]  ;;  %v1118_v50 = vld [vmem:[#allocation11 + $0x38] sm:$0xff] }
  0x36   :  { %v1115_v57 = vld [vmem:[#allocation11 + $0x20] sm:$0xff]  ;;  %v1130_v58 = vld [vmem:[%s1410_s4] ss:$0 sm:$0xff] }
  0x37   :  { %267 = vmatpush.bf16.msrb.mxu2 %v822_v47  ;;  %v1105_v47 = vld [vmem:[#allocation10 + $0x10] sm:$0xff] }
  0x38   :  { %280 = vmatpush.bf16.msrb.mxu3 %v826_v48  ;;  %560 = vmatpush.bf16.msra.mxu0 %v1073_v61  ;;  %v1104_v48 = vld [vmem:[#allocation10 + $0x8] sm:$0xff]  ;;  %v1113_v61 = vld [vmem:[#allocation11 + $0x10] sm:$0xff] }
  0x39   :  { %573 = vmatpush.bf16.msra.mxu1 %v1081_v62 }
  0x3b   :  { %268 = vmatpush.bf16.msrb.mxu2 %v806_v55 }
  0x3c   :  { %281 = vmatpush.bf16.msrb.mxu3 %v810_v56  ;;  %561 = vmatpush.bf16.msra.mxu0 %v1072_v1 }
  0x3d   :  { %574 = vmatpush.bf16.msra.mxu1 %v1080_v2 }
  0x3e   :  { %861 = vmatmul.msk.bf16.vlgmr.msrb.gmra.mxu2 %vm231_vm0, %v124_v38 }
  0x3f   :  { %581 = vmatpush.bf16.msra.mxu2 %v1094_v59  ;;  %862 = vmatmul.msk.bf16.vlgmr.msrb.gmra.mxu3 %vm231_vm0, %v124_v38  ;;  %v1114_v59 = vld [vmem:[#allocation11 + $0x18] sm:$0xff] }
  0x40   :  { %594 = vmatpush.bf16.msra.mxu3 %v1102_v60  ;;  %562 = vmatpush.bf16.msra.mxu0 %v1071_v5 }
  0x41   :  { %575 = vmatpush.bf16.msra.mxu1 %v1079_v6 }
  0x43   :  { %582 = vmatpush.bf16.msra.mxu2 %v1093_v63 }
  0x44   :  { %595 = vmatpush.bf16.msra.mxu3 %v1101_v0  ;;  %677 = vmatpush.bf16.msrb.mxu0 %v1110_v42 }
  0x45   :  { %760 = vmatpush.bf16.msrb.mxu1 %v1118_v50 }
  0x47   :  { %583 = vmatpush.bf16.msra.mxu2 %v1092_v3 }
  0x48   :  { %596 = vmatpush.bf16.msra.mxu3 %v1100_v4  ;;  %678 = vmatpush.bf16.msrb.mxu0 %v1109_v43 }
  0x49   :  { %761 = vmatpush.bf16.msrb.mxu1 %v1117_v53 }
  0x4b   :  { %584 = vmatpush.bf16.msra.mxu2 %v1091_v7  ;;  %v1112_v7 = vld [vmem:[#allocation11 + $0x8] sm:$0xff] }
  0x4c   :  { %597 = vmatpush.bf16.msra.mxu3 %v1099_v8  ;;  %679 = vmatpush.bf16.msrb.mxu0 %v1108_v44  ;;  %v1111_v8 = vld [vmem:[#allocation11] sm:$0xff] }
  0x4d   :  { %762 = vmatpush.bf16.msrb.mxu1 %v1116_v54 }
  0x4f   :  { %585 = vmatpush.bf16.msra.mxu2 %v1090_v9  ;;  %v1131_v9 = vld [vmem:[%s1412_s6] ss:$0 sm:$0xff] }
  0x50   :  { %598 = vmatpush.bf16.msra.mxu3 %v1098_v10  ;;  %680 = vmatpush.bf16.msrb.mxu0 %v1107_v45 }
  0x51   :  { %763 = vmatpush.bf16.msrb.mxu1 %v1115_v57 }
  0x53   :  { %586 = vmatpush.bf16.msra.mxu2 %v1089_v11 }
  0x54   :  { %599 = vmatpush.bf16.msra.mxu3 %v1097_v12  ;;  %681 = vmatpush.bf16.msrb.mxu0 %v1106_v46 }
  0x55   :  { %764 = vmatpush.bf16.msrb.mxu1 %v1114_v59 }
  0x57   :  { %587 = vmatpush.bf16.msra.mxu2 %v1088_v13 }
  0x58   :  { %600 = vmatpush.bf16.msra.mxu3 %v1096_v14  ;;  %682 = vmatpush.bf16.msrb.mxu0 %v1105_v47 }
  0x59   :  { %765 = vmatpush.bf16.msrb.mxu1 %v1113_v61 }
  0x5b   :  { %588 = vmatpush.bf16.msra.mxu2 %v1087_v15  ;;  %v1132_v15 = vld [vmem:[%s1414_s8] ss:$0 sm:$0xff] }
  0x5c   :  { %601 = vmatpush.bf16.msra.mxu3 %v1095_v16  ;;  %683 = vmatpush.bf16.msrb.mxu0 %v1104_v48 }
  0x5d   :  { %766 = vmatpush.bf16.msrb.mxu1 %v1112_v7 }
  0x60   :  { %684 = vmatpush.bf16.msrb.mxu0 %v1103_v49 }
  0x61   :  { %767 = vmatpush.bf16.msrb.mxu1 %v1111_v8 }
  0xb1   :  { %v244_v20 = vpop.f32.mrf.mxu2 }
  0xb2   :  { %v245_v21 = vadd.f32 %v244_v20, %v143_v18  ;;  %v257_v22 = vpop.f32.mrf.mxu3 }
  0xb3   :  { %v258_v23 = vadd.f32 %v257_v22, %v144_v19 }
  0xb4   :  { %v287_v24 = vmax.f32 %v245_v21, 0.0 }
  0xb5   :  { %v288_v25 = vmax.f32 %v258_v23, 0.0 }
  0xb6   :  { %v291_v26 = vpack.c.bf16 %v287_v24, %v287_v24 }
  0xb7   :  { %v292_v27 = vpack.c.bf16 %v288_v25, %v288_v25 }
  0xb8   :  { %563 = vmatmul.bf16.vlgmr.msra.gmra.mxu0 %v291_v26 }
  0xb9   :  { %576 = vmatmul.bf16.vlgmr.msra.gmra.mxu1 %v292_v27  ;;  %v246_v28 = vpop.f32.mrf.mxu2 }
  0xba   :  { %v259_v29 = vpop.f32.mrf.mxu3 }
  0xc1   :  { %v270_v32 = vpop.f32.mrf.mxu2 }
  0xc2   :  { %v271_v33 = vadd.f32 %v270_v32, %v145_v30  ;;  %v283_v34 = vpop.f32.mrf.mxu3 }
  0xc3   :  { %v284_v35 = vadd.f32 %v283_v34, %v146_v31 }
  0xc4   :  { %v289_v36 = vmax.f32 %v271_v33, 0.0 }
  0xc5   :  { %v290_v37 = vmax.f32 %v284_v35, 0.0 }
  0xc6   :  { %v293_v38 = vpack.c.bf16 %v289_v36, %v289_v36 }
  0xc7   :  { %v294_v39 = vpack.c.bf16 %v290_v37, %v290_v37 }
  0xc8   :  { %589 = vmatmul.bf16.vlgmr.msra.gmra.mxu2 %v293_v38 }
  0xc9   :  { %602 = vmatmul.bf16.vlgmr.msra.gmra.mxu3 %v294_v39  ;;  %v272_v40 = vpop.f32.mrf.mxu2 }
  0xca   :  { %v285_v41 = vpop.f32.mrf.mxu3 }
 0x135   :  { %v564_v51 = vpop.f32.mrf.mxu0 }
 0x136   :  { %v577_v52 = vpop.f32.mrf.mxu1  ;;  %v565_v60 = vadd.f32 %v1130_v58, %v564_v51 }
 0x138   :  { %v578_v62 = vadd.f32 %v577_v52, %v565_v60 }
 0x13d   :  { %v566_v55 = vpop.f32.mrf.mxu0 }
 0x13e   :  { %v579_v56 = vpop.f32.mrf.mxu1 }
 0x14b   :  { %v590_v63 = vpop.f32.mrf.mxu2 }
 0x14c   :  { %v591_v0 = vadd.f32 %v590_v63, %v578_v62  ;;  %v603_v1 = vpop.f32.mrf.mxu3 }
 0x14e   :  { %v604_v2 = vadd.f32 %v603_v1, %v591_v0 }
 0x150   :  { %v607_v3 = vmax.f32 %v604_v2, 0.0 }
 0x152   :  { %v608_v4 = vpack.c.bf16 %v607_v3, %v607_v3 }
 0x153   :  { %v592_v5 = vpop.f32.mrf.mxu2 }
 0x154   :  { %v605_v6 = vpop.f32.mrf.mxu3  ;;  %685 = vmatmul.bf16.vlgmr.msrb.gmra.mxu0 %v608_v4 }
 0x1d1   :  { %v686_v10 = vpop.f32.mrf.mxu0 }
 0x1d2   :  { %v687_v11 = vadd.f32 %v1131_v9, %v686_v10 }
 0x1d4   :  { %v690_v12 = vmax.f32 %v687_v11, 0.0 }
 0x1d6   :  { %v691_v13 = vpack.c.bf16 %v690_v12, %v690_v12 }
 0x1d8   :  { %768 = vmatmul.bf16.vlgmr.msrb.gmra.mxu1 %v691_v13 }
 0x1d9   :  { %v688_v14 = vpop.f32.mrf.mxu0 }
 0x255   :  { %v769_v16 = vpop.f32.mrf.mxu1 }
 0x256   :  { %v770_v17 = vadd.f32 %v1132_v15, %v769_v16 }
 0x258   :  { %v773_v18 = vpack.c.bf16 %v770_v17, %v770_v17 }
 0x25a   :  { %774 = vst [vmem:[#allocation13] sm:$0xf] %v773_v18 }
 0x25b   :  { %785 = dma.vmem_to_hbm [thread:$0]  %s781_s22, 64, %s783_s24, [#allocation4]  }
 0x25d   :  { %v771_v19 = vpop.f32.mrf.mxu1 }
 0x25e   :  { %1309 = dma.done.wait [#allocation4], 64  }
 0x25f   :  { %1310 = vsyncadd [#allocation4], 4294967232 }
 0x260   :  { %790 = vsyncpa [#allocation3], 1 }
 0x261   :  { %791 = vsyncpa [#allocation6], 1 }
 0x262   :  { %792 = vsyncpa [#allocation9], 1 }
 0x263   :  { %793 = vsyncpa [#allocation12], 1 }
 0x264   :  { %794 = vsyncpa [#allocation4], 1 }

</bundles_post_ra>
